<compile_context>
chip_gen: v7x
topology: tpu7x:2x2x1
jax: 0.10.0
libtpu: 0.0.40
codegen_flags: <defaults>
</compile_context>

<pallas_src>
import jax
import jax.numpy as jnp
from jax import lax
from jax.experimental import pallas as pl
from jax.experimental.pallas import tpu as pltpu


def bnn_conv1d_kernel(x_ref, w1_ref, b1_ref, w2_ref, b2_ref, o_ref):
    """One batch tile: b_blk sequences folded into M = b_blk*T matmul rows.

    x_ref : (1, M, C_in) f32   raw input block
    w1_ref: (3, C_in, 32) bf16 conv1 weight, tap k multiplies x[t + k - 1]
    b1_ref: (1, 32) f32
    w2_ref: (3, 32, 64) bf16
    b2_ref: (1, 64) f32
    o_ref : (1, b_blk, 64) f32 pooled (time-mean) features
    """
    _, M, _ = x_ref.shape
    b_blk, C2 = o_ref.shape[1], o_ref.shape[2]
    T = M // b_blk

    # In-kernel sequence-boundary masks (replaces the DMA'd (M, 1) nf/nl inputs).
    t = lax.broadcasted_iota(jnp.int32, (M, 1), 0) % T
    seq_start = t == 0         # row is t == 0   of its sequence
    seq_end = t == T - 1       # row is t == T-1 of its sequence

    def taps(h):
        # h[m-1] / h[m+1] along the folded (batch*time) sublane axis; the taps
        # that would leak across sequence boundaries are zeroed by the masks.
        h_prev = jnp.where(seq_start, 0.0,
                           jnp.concatenate([h[:1], h[:-1]], axis=0))
        h_next = jnp.where(seq_end, 0.0,
                           jnp.concatenate([h[1:], h[-1:]], axis=0))
        return h_prev, h_next

    def conv_relu(prev, mid, nxt, w_ref, b_ref):
        # k=3 conv as 3 accumulating MXU matmuls (no (M, 3*C) lane-concat),
        # bf16 inputs with f32 accumulation.
        wdt = w_ref.dtype
        acc = jnp.dot(prev.astype(wdt), w_ref[0],
                      preferred_element_type=jnp.float32)
        acc = acc + jnp.dot(mid.astype(wdt), w_ref[1],
                            preferred_element_type=jnp.float32)
        acc = acc + jnp.dot(nxt.astype(wdt), w_ref[2],
                            preferred_element_type=jnp.float32)
        return jnp.maximum(acc + b_ref[...], 0.0)

    # ---- conv1 + ReLU (im2col shifts done in-kernel on the raw input) ------
    x = x_ref[0]                                        # (M, C_in) f32
    x_m1, x_p1 = taps(x)
    h1 = conv_relu(x_m1, x, x_p1, w1_ref, b1_ref)       # (M, 32) f32
    # TODO(synk): training-mode dropout (Bernoulli mask + rescale) not implemented.

    # ---- conv2 + ReLU -------------------------------------------------------
    h1_m1, h1_p1 = taps(h1)
    h2 = conv_relu(h1_m1, h1, h1_p1, w2_ref, b2_ref)    # (M, 64) f32

    # ---- AdaptiveAvgPool1d(1): per-sequence mean over time, in-kernel ------
    o_ref[0] = jnp.sum(h2.reshape(b_blk, T, C2), axis=1) * (1.0 / T)


def bnn_conv1d_forward(x, params, *, target_rows=1024):
    """x: (B, T, C_in) float32 -> (B, 1) float32.

    target_rows: desired matmul rows per grid step (M = b_blk * T). 1024 keeps
    every generation comfortably inside VMEM while amortizing per-step
    overhead; the tile is shrunk automatically so the grid has >= 2 steps
    whenever B >= 2 (v7x megacore sharding of the "parallel" batch axis).
    """
    B, T, C_in = x.shape
    w1, b1, w2, b2, wf, bf = params
    C2 = w2.shape[-1]

    # ---- batch-tile selection ----------------------------------------------
    b_blk = max(1, min(B, target_rows // max(T, 1)))
    if B >= 2:
        b_blk = min(b_blk, (B + 1) // 2)   # ensure n_blk >= 2 for v7x megacore
    n_blk = pl.cdiv(B, b_blk)
    Bpad = n_blk * b_blk
    M = b_blk * T

    # Pad batch to a multiple of the tile (padded rows are discarded after the
    # kernel); fold into (n_blk, M, C_in) so every block equals full trailing
    # dims regardless of T (no (8,128) divisibility concerns).
    if Bpad != B:
        x = jnp.concatenate(
            [x, jnp.zeros((Bpad - B, T, C_in), x.dtype)], axis=0)
    x3 = x.reshape(n_blk, M, C_in)

    pooled = pl.pallas_call(
        bnn_conv1d_kernel,
        out_shape=jax.ShapeDtypeStruct((n_blk, b_blk, C2), jnp.float32),
        grid_spec=pltpu.PrefetchScalarGridSpec(
            num_scalar_prefetch=0,
            grid=(n_blk,),
            in_specs=[
                pl.BlockSpec((1, M, C_in), lambda i: (i, 0, 0)),        # x
                pl.BlockSpec(w1.shape, lambda i: (0, 0, 0)),            # conv1 w
                pl.BlockSpec(b1.shape, lambda i: (0, 0)),               # conv1 b
                pl.BlockSpec(w2.shape, lambda i: (0, 0, 0)),            # conv2 w
                pl.BlockSpec(b2.shape, lambda i: (0, 0)),               # conv2 b
            ],
            out_specs=pl.BlockSpec((1, b_blk, C2), lambda i: (i, 0, 0)),
        ),
        compiler_params=pltpu.CompilerParams(
            dimension_semantics=("parallel",)),
    )(x3, w1, b1, w2, b2)

    # fc: Linear(64, 1) applied in XLA on the lane-dense pooled features
    # (keeps the kernel's output block lane-dense instead of a 1-wide store).
    return pooled.reshape(Bpad, C2)[:B] @ wf + bf


def init_params(key, input_channels):
    """Deterministic synthetic parameters matching the PyTorch module shapes."""
    k1, k2, k3, k4, k5, k6 = jax.random.split(key, 6)
    # PyTorch layouts:
    #   conv1.weight: (32, C_in, 3), conv1.bias: (32,)
    #   conv2.weight: (64, 32, 3),   conv2.bias: (64,)
    #   fc.weight:    (1, 64),       fc.bias:    (1,)
    conv1_w = 0.1 * jax.random.normal(k1, (32, input_channels, 3), jnp.float32)
    conv1_b = 0.1 * jax.random.normal(k2, (32,), jnp.float32)
    conv2_w = 0.1 * jax.random.normal(k3, (64, 32, 3), jnp.float32)
    conv2_b = 0.1 * jax.random.normal(k4, (64,), jnp.float32)
    fc_w = 0.1 * jax.random.normal(k5, (1, 64), jnp.float32)
    fc_b = 0.1 * jax.random.normal(k6, (1,), jnp.float32)

    # Kernel layouts: conv weights as (K, C_in, C_out) bf16, so w[k] multiplies
    # the tap x[t + k - 1]; fc stays f32 (applied in XLA on pooled features).
    w1 = jnp.transpose(conv1_w, (2, 1, 0)).astype(jnp.bfloat16)
    w2 = jnp.transpose(conv2_w, (2, 1, 0)).astype(jnp.bfloat16)
    return (w1, conv1_b.reshape(1, 32),
            w2, conv2_b.reshape(1, 64),
            jnp.transpose(fc_w, (1, 0)), fc_b.reshape(1, 1))


def reference_forward(x, params):
    """Pure-JAX f32 reference (same bf16-rounded weights, so the only
    kernel-vs-reference delta is bf16 activation rounding on the MXU path)."""
    w1, b1, w2, b2, wf, bf = params
    w1 = w1.astype(jnp.float32)
    w2 = w2.astype(jnp.float32)

    def conv_relu(h, w, b):  # h: (B, T, Cin)
        z = jnp.zeros_like(h[:, :1, :])
        h_m1 = jnp.concatenate([z, h[:, :-1, :]], axis=1)
        h_p1 = jnp.concatenate([h[:, 1:, :], z], axis=1)
        y = (jnp.einsum("btc,co->bto", h_m1, w[0])
             + jnp.einsum("btc,co->bto", h, w[1])
             + jnp.einsum("btc,co->bto", h_p1, w[2]) + b)
        return jnp.maximum(y, 0.0)

    h1 = conv_relu(x, w1, b1)
    h2 = conv_relu(h1, w2, b2)
    pooled = jnp.mean(h2, axis=1)          # (B, 64)
    return pooled @ wf + bf                # (B, 1)


if __name__ == "__main__":
    key = jax.random.PRNGKey(0)
    k_x, k_p = jax.random.split(key)

    B, T, C_in = 2, 16, 4                  # (batch, seq, input_channels)
    x = jax.random.normal(k_x, (B, T, C_in), jnp.float32)
    params = init_params(k_p, C_in)

    fwd = jax.jit(bnn_conv1d_forward)
    out = jax.block_until_ready(fwd(x, params))

    ref = reference_forward(x, params)
    assert out.shape == (B, 1), out.shape
    # bf16 MXU inputs with f32 accumulation -> loosened tolerance.
    assert jnp.allclose(out, ref, atol=2e-2, rtol=2e-2), (out, ref)

    print("KERNEL_OK")
</pallas_src>

<mosaic_0001>
module attributes {stable_mosaic.version = 11 : i64} {
  func.func @bnn_conv1d_kernel(%arg0: i32, %arg1: memref<1x16x4xf32, #tpu.memory_space<vmem>>, %arg2: memref<3x4x32xbf16, #tpu.memory_space<vmem>>, %arg3: memref<1x32xf32, #tpu.memory_space<vmem>>, %arg4: memref<3x32x64xbf16, #tpu.memory_space<vmem>>, %arg5: memref<1x64xf32, #tpu.memory_space<vmem>>, %arg6: memref<1x1x64xf32, #tpu.memory_space<vmem>>) attributes {dimension_semantics = [#tpu.dimension_semantics<parallel>], iteration_bounds = array<i64: 2>, scalar_prefetch = 0 : i64, scratch_operands = 0 : i64, tpu.core_type = #tpu.core_type<tc>, window_params = [{transform_indices = @transform_0, window_bounds = array<i64: 1, 16, 4>}, {pipeline_mode = #tpu.pipeline_mode<synchronous>, transform_indices = @transform_1, window_bounds = array<i64: 3, 4, 32>}, {pipeline_mode = #tpu.pipeline_mode<synchronous>, transform_indices = @transform_2, window_bounds = array<i64: 1, 32>}, {pipeline_mode = #tpu.pipeline_mode<synchronous>, transform_indices = @transform_3, window_bounds = array<i64: 3, 32, 64>}, {pipeline_mode = #tpu.pipeline_mode<synchronous>, transform_indices = @transform_4, window_bounds = array<i64: 1, 64>}, {transform_indices = @transform_5, window_bounds = array<i64: 1, 1, 64>}]} {
    %0 = tpu.iota {dimensions = array<i32: 0>} : vector<16x1xi32>
    %c16_i32 = arith.constant 16 : i32
    %c0_i32 = arith.constant 0 : i32
    %1 = arith.cmpi eq, %c16_i32, %c0_i32 : i32
    %c1_i32 = arith.constant 1 : i32
    %2 = arith.select %1, %c1_i32, %c16_i32 : i32
    %3 = vector.broadcast %2 : i32 to vector<16x1xi32>
    %4 = arith.remsi %0, %3 : vector<16x1xi32>
    %c0_i32_0 = arith.constant 0 : i32
    %5 = vector.broadcast %c0_i32_0 : i32 to vector<16x1xi32>
    %6 = arith.cmpi ne, %4, %5 : vector<16x1xi32>
    %c0_i32_1 = arith.constant 0 : i32
    %7 = vector.broadcast %c0_i32_1 : i32 to vector<16x1xi32>
    %8 = arith.cmpi slt, %4, %7 : vector<16x1xi32>
    %c0_i32_2 = arith.constant 0 : i32
    %9 = arith.cmpi slt, %2, %c0_i32_2 : i32
    %10 = vector.broadcast %9 : i1 to vector<16x1xi1>
    %11 = vector.broadcast %10 : vector<16x1xi1> to vector<16x1xi1>
    %12 = arith.xori %8, %11 : vector<16x1xi1>
    %13 = arith.andi %12, %6 : vector<16x1xi1>
    %14 = vector.broadcast %2 : i32 to vector<16x1xi32>
    %15 = arith.addi %4, %14 : vector<16x1xi32>
    %16 = arith.select %13, %15, %4 : vector<16x1xi1>, vector<16x1xi32>
    %c0_i32_3 = arith.constant 0 : i32
    %17 = vector.broadcast %c0_i32_3 : i32 to vector<16x1xi32>
    %18 = arith.cmpi eq, %16, %17 : vector<16x1xi32>
    %c15_i32 = arith.constant 15 : i32
    %19 = vector.broadcast %c15_i32 : i32 to vector<16x1xi32>
    %20 = arith.cmpi eq, %16, %19 : vector<16x1xi32>
    %c0 = arith.constant 0 : index
    %c0_4 = arith.constant 0 : index
    %c0_5 = arith.constant 0 : index
    %21 = vector.load %arg1[%c0, %c0_4, %c0_5] : memref<1x16x4xf32, #tpu.memory_space<vmem>>, vector<1x16x4xf32>
    %22 = vector.shape_cast %21 : vector<1x16x4xf32> to vector<16x4xf32>
    %23 = vector.extract_strided_slice %22 {offsets = [0, 0], sizes = [1, 4], strides = [1, 1]} : vector<16x4xf32> to vector<1x4xf32>
    %24 = vector.extract_strided_slice %22 {offsets = [0, 0], sizes = [15, 4], strides = [1, 1]} : vector<16x4xf32> to vector<15x4xf32>
    %25 = tpu.concatenate %23, %24 in 0 : vector<1x4xf32>, vector<15x4xf32> -> vector<16x4xf32>
    %cst = arith.constant 0.000000e+00 : f32
    %26 = vector.shape_cast %18 : vector<16x1xi1> to vector<16x1xi1>
    %27 = vector.broadcast %26 : vector<16x1xi1> to vector<16x4xi1>
    %28 = vector.broadcast %cst : f32 to vector<16x4xf32>
    %29 = arith.select %27, %28, %25 : vector<16x4xi1>, vector<16x4xf32>
    %30 = vector.extract_strided_slice %22 {offsets = [1, 0], sizes = [15, 4], strides = [1, 1]} : vector<16x4xf32> to vector<15x4xf32>
    %31 = vector.extract_strided_slice %22 {offsets = [15, 0], sizes = [1, 4], strides = [1, 1]} : vector<16x4xf32> to vector<1x4xf32>
    %32 = tpu.concatenate %30, %31 in 0 : vector<15x4xf32>, vector<1x4xf32> -> vector<16x4xf32>
    %cst_6 = arith.constant 0.000000e+00 : f32
    %33 = vector.shape_cast %20 : vector<16x1xi1> to vector<16x1xi1>
    %34 = vector.broadcast %33 : vector<16x1xi1> to vector<16x4xi1>
    %35 = vector.broadcast %cst_6 : f32 to vector<16x4xf32>
    %36 = arith.select %34, %35, %32 : vector<16x4xi1>, vector<16x4xf32>
    %37 = arith.truncf %29 : vector<16x4xf32> to vector<16x4xbf16>
    %c0_7 = arith.constant 0 : index
    %c0_8 = arith.constant 0 : index
    %c0_9 = arith.constant 0 : index
    %38 = vector.load %arg2[%c0_7, %c0_8, %c0_9] : memref<3x4x32xbf16, #tpu.memory_space<vmem>>, vector<1x4x32xbf16>
    %39 = vector.shape_cast %38 : vector<1x4x32xbf16> to vector<4x32xbf16>
    %cst_10 = arith.constant dense<0.000000e+00> : vector<16x32xf32>
    %40 = tpu.matmul %37, %39, %cst_10 {dimension_numbers = #tpu.dot_dimension_numbers<[1], [0], [0], [1], [0, 0, 1, 1], [], []>} : vector<16x4xbf16>, vector<4x32xbf16>, vector<16x32xf32> -> vector<16x32xf32>
    %41 = arith.truncf %22 : vector<16x4xf32> to vector<16x4xbf16>
    %c1 = arith.constant 1 : index
    %c0_11 = arith.constant 0 : index
    %c0_12 = arith.constant 0 : index
    %42 = vector.load %arg2[%c1, %c0_11, %c0_12] : memref<3x4x32xbf16, #tpu.memory_space<vmem>>, vector<1x4x32xbf16>
    %43 = vector.shape_cast %42 : vector<1x4x32xbf16> to vector<4x32xbf16>
    %cst_13 = arith.constant dense<0.000000e+00> : vector<16x32xf32>
    %44 = tpu.matmul %41, %43, %cst_13 {dimension_numbers = #tpu.dot_dimension_numbers<[1], [0], [0], [1], [0, 0, 1, 1], [], []>} : vector<16x4xbf16>, vector<4x32xbf16>, vector<16x32xf32> -> vector<16x32xf32>
    %45 = arith.addf %40, %44 : vector<16x32xf32>
    %46 = arith.truncf %36 : vector<16x4xf32> to vector<16x4xbf16>
    %c2 = arith.constant 2 : index
    %c0_14 = arith.constant 0 : index
    %c0_15 = arith.constant 0 : index
    %47 = vector.load %arg2[%c2, %c0_14, %c0_15] : memref<3x4x32xbf16, #tpu.memory_space<vmem>>, vector<1x4x32xbf16>
    %48 = vector.shape_cast %47 : vector<1x4x32xbf16> to vector<4x32xbf16>
    %cst_16 = arith.constant dense<0.000000e+00> : vector<16x32xf32>
    %49 = tpu.matmul %46, %48, %cst_16 {dimension_numbers = #tpu.dot_dimension_numbers<[1], [0], [0], [1], [0, 0, 1, 1], [], []>} : vector<16x4xbf16>, vector<4x32xbf16>, vector<16x32xf32> -> vector<16x32xf32>
    %50 = arith.addf %45, %49 : vector<16x32xf32>
    %c0_17 = arith.constant 0 : index
    %c0_18 = arith.constant 0 : index
    %51 = vector.load %arg3[%c0_17, %c0_18] : memref<1x32xf32, #tpu.memory_space<vmem>>, vector<1x32xf32>
    %52 = vector.broadcast %51 : vector<1x32xf32> to vector<16x32xf32>
    %53 = arith.addf %50, %52 : vector<16x32xf32>
    %cst_19 = arith.constant 0.000000e+00 : f32
    %54 = vector.broadcast %cst_19 : f32 to vector<16x32xf32>
    %55 = arith.maximumf %53, %54 : vector<16x32xf32>
    %56 = vector.extract_strided_slice %55 {offsets = [0, 0], sizes = [1, 32], strides = [1, 1]} : vector<16x32xf32> to vector<1x32xf32>
    %57 = vector.extract_strided_slice %55 {offsets = [0, 0], sizes = [15, 32], strides = [1, 1]} : vector<16x32xf32> to vector<15x32xf32>
    %58 = tpu.concatenate %56, %57 in 0 : vector<1x32xf32>, vector<15x32xf32> -> vector<16x32xf32>
    %cst_20 = arith.constant 0.000000e+00 : f32
    %59 = vector.shape_cast %18 : vector<16x1xi1> to vector<16x1xi1>
    %60 = vector.broadcast %59 : vector<16x1xi1> to vector<16x32xi1>
    %61 = vector.broadcast %cst_20 : f32 to vector<16x32xf32>
    %62 = arith.select %60, %61, %58 : vector<16x32xi1>, vector<16x32xf32>
    %63 = vector.extract_strided_slice %55 {offsets = [1, 0], sizes = [15, 32], strides = [1, 1]} : vector<16x32xf32> to vector<15x32xf32>
    %64 = vector.extract_strided_slice %55 {offsets = [15, 0], sizes = [1, 32], strides = [1, 1]} : vector<16x32xf32> to vector<1x32xf32>
    %65 = tpu.concatenate %63, %64 in 0 : vector<15x32xf32>, vector<1x32xf32> -> vector<16x32xf32>
    %cst_21 = arith.constant 0.000000e+00 : f32
    %66 = vector.shape_cast %20 : vector<16x1xi1> to vector<16x1xi1>
    %67 = vector.broadcast %66 : vector<16x1xi1> to vector<16x32xi1>
    %68 = vector.broadcast %cst_21 : f32 to vector<16x32xf32>
    %69 = arith.select %67, %68, %65 : vector<16x32xi1>, vector<16x32xf32>
    %70 = arith.truncf %62 : vector<16x32xf32> to vector<16x32xbf16>
    %c0_22 = arith.constant 0 : index
    %c0_23 = arith.constant 0 : index
    %c0_24 = arith.constant 0 : index
    %71 = vector.load %arg4[%c0_22, %c0_23, %c0_24] : memref<3x32x64xbf16, #tpu.memory_space<vmem>>, vector<1x32x64xbf16>
    %72 = vector.shape_cast %71 : vector<1x32x64xbf16> to vector<32x64xbf16>
    %cst_25 = arith.constant dense<0.000000e+00> : vector<16x64xf32>
    %73 = tpu.matmul %70, %72, %cst_25 {dimension_numbers = #tpu.dot_dimension_numbers<[1], [0], [0], [1], [0, 0, 1, 1], [], []>} : vector<16x32xbf16>, vector<32x64xbf16>, vector<16x64xf32> -> vector<16x64xf32>
    %74 = arith.truncf %55 : vector<16x32xf32> to vector<16x32xbf16>
    %c1_26 = arith.constant 1 : index
    %c0_27 = arith.constant 0 : index
    %c0_28 = arith.constant 0 : index
    %75 = vector.load %arg4[%c1_26, %c0_27, %c0_28] : memref<3x32x64xbf16, #tpu.memory_space<vmem>>, vector<1x32x64xbf16>
    %76 = vector.shape_cast %75 : vector<1x32x64xbf16> to vector<32x64xbf16>
    %cst_29 = arith.constant dense<0.000000e+00> : vector<16x64xf32>
    %77 = tpu.matmul %74, %76, %cst_29 {dimension_numbers = #tpu.dot_dimension_numbers<[1], [0], [0], [1], [0, 0, 1, 1], [], []>} : vector<16x32xbf16>, vector<32x64xbf16>, vector<16x64xf32> -> vector<16x64xf32>
    %78 = arith.addf %73, %77 : vector<16x64xf32>
    %79 = arith.truncf %69 : vector<16x32xf32> to vector<16x32xbf16>
    %c2_30 = arith.constant 2 : index
    %c0_31 = arith.constant 0 : index
    %c0_32 = arith.constant 0 : index
    %80 = vector.load %arg4[%c2_30, %c0_31, %c0_32] : memref<3x32x64xbf16, #tpu.memory_space<vmem>>, vector<1x32x64xbf16>
    %81 = vector.shape_cast %80 : vector<1x32x64xbf16> to vector<32x64xbf16>
    %cst_33 = arith.constant dense<0.000000e+00> : vector<16x64xf32>
    %82 = tpu.matmul %79, %81, %cst_33 {dimension_numbers = #tpu.dot_dimension_numbers<[1], [0], [0], [1], [0, 0, 1, 1], [], []>} : vector<16x32xbf16>, vector<32x64xbf16>, vector<16x64xf32> -> vector<16x64xf32>
    %83 = arith.addf %78, %82 : vector<16x64xf32>
    %c0_34 = arith.constant 0 : index
    %c0_35 = arith.constant 0 : index
    %84 = vector.load %arg5[%c0_34, %c0_35] : memref<1x64xf32, #tpu.memory_space<vmem>>, vector<1x64xf32>
    %85 = vector.broadcast %84 : vector<1x64xf32> to vector<16x64xf32>
    %86 = arith.addf %83, %85 : vector<16x64xf32>
    %cst_36 = arith.constant 0.000000e+00 : f32
    %87 = vector.broadcast %cst_36 : f32 to vector<16x64xf32>
    %88 = arith.maximumf %86, %87 : vector<16x64xf32>
    %89 = vector.shape_cast %88 : vector<16x64xf32> to vector<1x16x64xf32>
    %cst_37 = arith.constant dense<0.000000e+00> : vector<1x64xf32>
    %90 = vector.multi_reduction <add>, %89, %cst_37 [1] : vector<1x16x64xf32> to vector<1x64xf32>
    %cst_38 = arith.constant 6.250000e-02 : f32
    %91 = vector.broadcast %cst_38 : f32 to vector<1x64xf32>
    %92 = arith.mulf %90, %91 : vector<1x64xf32>
    %c0_39 = arith.constant 0 : index
    %c0_40 = arith.constant 0 : index
    %c0_41 = arith.constant 0 : index
    %93 = vector.load %arg6[%c0_39, %c0_40, %c0_41] : memref<1x1x64xf32, #tpu.memory_space<vmem>>, vector<1x1x64xf32>
    %94 = vector.shape_cast %93 : vector<1x1x64xf32> to vector<1x64xf32>
    %95 = vector.shape_cast %92 : vector<1x64xf32> to vector<1x1x64xf32>
    tpu.vector_store %arg6[%c0_39, %c0_40, %c0_41], %95 {strides = array<i32>} : memref<1x1x64xf32, #tpu.memory_space<vmem>>, vector<1x1x64xf32>,
    return
  }
  func.func @transform_0(%arg0: i32) -> (i32, i32, i32) {
    %c0_i32 = arith.constant 0 : i32
    %c0_i32_0 = arith.constant 0 : i32
    %c0_i32_1 = arith.constant 0 : i32
    return %arg0, %c0_i32, %c0_i32_0 : i32, i32, i32
  }
  func.func @transform_1(%arg0: i32) -> (i32, i32, i32) {
    %c0_i32 = arith.constant 0 : i32
    %c0_i32_0 = arith.constant 0 : i32
    %c0_i32_1 = arith.constant 0 : i32
    %c0_i32_2 = arith.constant 0 : i32
    return %c0_i32, %c0_i32_0, %c0_i32_1 : i32, i32, i32
  }
  func.func @transform_2(%arg0: i32) -> (i32, i32) {
    %c0_i32 = arith.constant 0 : i32
    %c0_i32_0 = arith.constant 0 : i32
    %c0_i32_1 = arith.constant 0 : i32
    return %c0_i32, %c0_i32_0 : i32, i32
  }
  func.func @transform_3(%arg0: i32) -> (i32, i32, i32) {
    %c0_i32 = arith.constant 0 : i32
    %c0_i32_0 = arith.constant 0 : i32
    %c0_i32_1 = arith.constant 0 : i32
    %c0_i32_2 = arith.constant 0 : i32
    return %c0_i32, %c0_i32_0, %c0_i32_1 : i32, i32, i32
  }
  func.func @transform_4(%arg0: i32) -> (i32, i32) {
    %c0_i32 = arith.constant 0 : i32
    %c0_i32_0 = arith.constant 0 : i32
    %c0_i32_1 = arith.constant 0 : i32
    return %c0_i32, %c0_i32_0 : i32, i32
  }
  func.func @transform_5(%arg0: i32) -> (i32, i32, i32) {
    %c0_i32 = arith.constant 0 : i32
    %c0_i32_0 = arith.constant 0 : i32
    %c0_i32_1 = arith.constant 0 : i32
    return %arg0, %c0_i32, %c0_i32_0 : i32, i32, i32
  }
}

</mosaic_0001>

<bundles_post_ra>
// kernel: bnn_conv1d_forward.1
= control target key start
LH: loop header
LB: loop body
LE: loop exit
PB: predicated region body
PF: predicated region fallthrough
CT: control target
= control target key end

     0   :  { %10 = vsyncpa [#allocation3], 0  ;;  %s940_s18 = smov 0   ;;  %s1069_s0 = inlined_call_operand.vmem [shape: f32[2,16,4], index: 0, kind: input, shape index: {}]   ;;  %s1070_s1 = inlined_call_operand.vmem [shape: bf16[3,4,32], index: 1, kind: input, shape index: {}]   ;;  %s1071_s2 = inlined_call_operand.vmem [shape: f32[1,32], index: 2, kind: input, shape index: {}]   ;;  %s1072_s3 = inlined_call_operand.hbm [shape: bf16[3,32,64], index: 3, kind: input, shape index: {}]   ;;  %s1073_s4 = inlined_call_operand.vmem [shape: f32[1,64], index: 4, kind: input, shape index: {}]   ;;  %s1074_s5 = inlined_call_operand.vmem [shape: f32[2,1,64], index: 5, kind: output, shape index: {}]  }
   0x1 LB: > { %s946_s19 = sadd.s32 4294967295, %s903_s18   ;;  %p753_p0 = scmp.ge.s32.totalorder %s903_s18, 1  ;;  %s903_s18 = sphi %s940_s18, %s16_s18  }
   0x2   : > { %p157_p1 = scmp.lt.s32.totalorder %s903_s18, 3  ;;  %s905_s20 = smov [#allocation2]  }
   0x3   : > { %s175_s21 = sshll.u32 %s905_s20, 4  ;;  %p1075_p3 = scmp.eq.s32.totalorder %s946_s19, 0  ;;  %s176_s21 = int_to_ptr.vmem [resolvable:$true] %s175_s21 }
   0x4   : > { %p950_p2 = pnand %p753_p0, %p157_p1  ;;  %s865_s26 = scalar_lea.hbm %s1072_s3, 768 }
   0x5   : > { %p866_p6 = scmp.ne.s32.totalorder %s1072_s3, %s865_s26  ;;  %p872_p10 = scmp.lt.u32.totalorder %s865_s26, %s1072_s3 }
   0x6   : > { %s1077_s22 = scalar_select %p950_p2, 1, 0 }
   0x7   : > { %p840_p4 = pneg %p950_p2 }
   0x9   : > { %p959_p5 = pnand %p1075_p3, %p840_p4 }
   0xb   : > { %p867_p7 = pneg %p959_p5 }
   0xd   : > { %p868_p8 = pnand %p867_p7, %p866_p6 }
   0xf   : > { %p869_p9 = pneg %p868_p8 }
  0x11   : > { %p874_p11 = pnand %p872_p10, %p869_p9 }
  0x13   : > { %877 = shalt.err (!%p874_p11)
}
  0x14   : > { %s878_s6 = scalar_lea.vmem %s176_s21, 768  ;;  %p886_p1 = scmp.lt.s32.totalorder %s176_s21, %s176_s21 }
  0x15   : > { %p879_p12 = scmp.ne.s32.totalorder %s176_s21, %s878_s6  ;;  %p887_p4 = scmp.lt.s32.totalorder %s878_s6, %s878_s6 }
  0x17   : > { %p881_p13 = pnand %p879_p12, %p867_p7  ;;  %p888_p3 = por %p887_p4, %p886_p1 }
  0x19   : > { %p882_p0 = pneg %p881_p13 }
  0x1b   : > { %p889_p2 = pnand %p888_p3, %p882_p0 }
  0x1d   : > { %892 = shalt.err (!%p889_p2)
}
  0x1e   : > { %s906_s7 = smov 64   ;;  %s907_s8 = smov 4  }
  0x1f   : > { %843 = dma.hbm_to_vmem [thread:$0]  (!%p959_p5), %s1072_s3, 768, %s176_s21, [#allocation3], %s906_s7, %s906_s7, %s907_s8  }
  0x20   : > { %p1079_p6 = scmp.ne.s32.totalorder %s1077_s22, 0 }
  0x21   : > { %p1080_p8 = scmp.eq.s32.totalorder (!%p1079_p6), %s946_s19, 0 }
  0x22   : > { %202 = sbr.rel (%p1079_p6) target bundleno = 527 (0x20f), region = 40 }
  0x29   : > { %898 = dma.done.wait (%p1080_p8), [#allocation3], 768   ;;  %p1081_p7 = pmov %p1080_p8 }
  0x2a   : > { %p228_p2 = scmp.lt.s32.totalorder %s946_s19, 1  ;;  %v237_v0 = vlaneseq  ;;  %v908_v1 = vmov 0.0   ;;  %vm909_vm0 = vmmov 0   ;;  %vm307_vm1 = vcmask 1041408   ;;  %v760_v6 = vld [vmem:[%s1070_s1 + $0x2] sm:$0x3] }
  0x2b   : > { %900 = vsyncadd (%p1081_p7), [#allocation3], 4294966528  ;;  %794 = vmatprep.subr.bf16.mxu0 %v908_v1  ;;  %800 = vmatprep.subr.bf16.mxu1 %v908_v1  ;;  %vm303_vm2 = vcmask 31744   ;;  %vm272_vm3 = vcmask 1040384   ;;  %vm285_vm4 = vcmask 1046528   ;;  %v309_v10 = vsel %vm307_vm1, %v760_v6, 0 }
  0x2c   : > { %796 = vmatprep.mubr.msk.bf16.mxu0 %vm909_vm0, %v908_v1  ;;  %s1087_s19 = smov (!%p228_p2, %s946_s19), 1  ;;  %802 = vmatprep.mubr.msk.bf16.mxu1 %vm909_vm0, %v908_v1  ;;  %v238_v2 = vshrl.u32 %v237_v0, 7  ;;  %v299_v7 = vld [vmem:[%s1070_s1] sm:$0x3]  ;;  %v763_v14 = vld [vmem:[%s1070_s1 + $0x4] sm:$0x3] }
  0x2d   : > { %s778_s11 = sshll.u32 %s1087_s19, 4  ;;  %v356_v11 = vsel %vm307_vm1, %v299_v7, 0  ;;  %795 = vmatpush3.bf16.msra.mxu0 %v309_v10  ;;  %v406_v17 = vsel %vm307_vm1, %v763_v14, 0  ;;  %v859_v29 = vld [vmem:[#allocation2 + $0x10] sm:$0xff]   ;;  %v860_v30 = vld [vmem:[#allocation2] sm:$0xff]   ;;  %v861_v31 = vld [vmem:[#allocation2 + $0x18] sm:$0xff]   ;;  %s235_s29 = scalar_lea.vmem %s1074_s5, %s1087_s19 }
  0x2e   : > { %v239_v3 = vadd.s32 8, %v238_v2  ;;  %v244_v4 = vand.u32 15, %v238_v2  ;;  %s232_s14 = scalar_lea.vmem %s1069_s0, %s778_s11  ;;  %801 = vmatpush3.bf16.msra.mxu1 %v356_v11  ;;  %806 = vmatprep.subr.bf16.mxu0 %v908_v1  ;;  %v862_v32 = vld [vmem:[#allocation2 + $0x8] sm:$0xff]   ;;  %v765_v44 = vld [vmem:[%s1071_s2] ss:$0 sm:$0xff]  ;;  %vm503_vm7 = vcmask 261120  }
  0x2f   : > { %v268_v8 = vld [vmem:[%s232_s14] sm:$0xff]  ;;  %v269_v12 = vld [vmem:[%s232_s14 + $0x8] sm:$0xff]  ;;  %812 = vmatprep.subr.bf16.mxu1 %v908_v1  ;;  %vm679_vm8 = vcmask 523264   ;;  %vm690_vm9 = vcmask 516096  }
  0x30   : > { %v251_v5 = vand.u32 15, %v239_v3  ;;  %vm1005_vm5 = vcmp.eq.s32.totalorder %v244_v4, 0  ;;  %v286_v13 = vrot.slane %v268_v8, 1  ;;  %v287_v15 = vrot.slane %v269_v12, 1  ;;  %v863_v56 = vld [vmem:[#allocation2 + $0x20] sm:$0xff]   ;;  %v864_v4 = vld [vmem:[#allocation2 + $0x28] sm:$0xff]  }
  0x31   : > { %v300_v16 = vpack.c.bf16 %v269_v12, %v268_v8  ;;  %v273_v18 = vrot.slane %v268_v8, 7  ;;  %v274_v19 = vrot.slane %v269_v12, 7 }
  0x32   : > { %vm1016_vm6 = vcmp.eq.s32.totalorder %v251_v5, 15  ;;  %v291_v22 = vsel %vm285_vm4, %v287_v15, %v269_v12  ;;  %v288_v27 = vsel %vm285_vm4, %v286_v13, %v287_v15 }
  0x33   : > { %v278_v21 = vsel %vm272_vm3, %v268_v8, %v273_v18  ;;  %797 = vmatmul.mubr.msk.bf16.vlgmr.msra.gmra.mrb[0].mxu0 %vm303_vm2, %v300_v16  ;;  %v275_v23 = vsel %vm272_vm3, %v273_v18, %v274_v19  ;;  %v297_v25 = vsel %vm1016_vm6, 0.0, %v291_v22 }
  0x34   : > { %v283_v24 = vsel %vm1005_vm5, 0.0, %v278_v21  ;;  %807 = vmatpush3.bf16.msra.mxu0 %v406_v17  ;;  %808 = vmatprep.mubr.msk.bf16.mxu0 %vm909_vm0, %v908_v1  ;;  %v399_v28 = vpack.c.bf16 %v297_v25, %v288_v27 }
  0x35   : > { %v298_v26 = vpack.c.bf16 %v275_v23, %v283_v24  ;;  %820 = vmatprep.subr.bf16.mxu0 %v908_v1 }
  0x37   : > { %803 = vmatmul.mubr.msk.bf16.vlgmr.msra.gmra.mrb[0].mxu1 %vm303_vm2, %v298_v26 }
  0x38   : > { %816 = vmatprep.mubr.msk.bf16.mxu1 %vm909_vm0, %v908_v1  ;;  %813 = vmatpush3.bf16.msra.mxu1 %v859_v29 }
  0x39   : > { %814 = vmatprep.subr.bf16.mxu1 %v908_v1 }
  0x3b   : > { %809 = vmatmul.mubr.msk.bf16.vlgmr.msra.gmra.mrb[4].mxu0 %vm303_vm2, %v399_v28 }
  0x3c   : > { %824 = vmatprep.mubr.msk.bf16.mxu0 %vm909_vm0, %v908_v1  ;;  %821 = vmatpush3.bf16.msra.mxu0 %v860_v30 }
  0x3d   : > { %815 = vmatpush3.bf16.msra.mxu1 %v861_v31  ;;  %822 = vmatprep.subr.bf16.mxu0 %v908_v1 }
  0x3e   : > { %828 = vmatprep.subr.bf16.mxu1 %v908_v1 }
  0x40   : > { %823 = vmatpush3.bf16.msra.mxu0 %v862_v32 }
 0x106   : > { %v345_v33 = vpop.f32.mrb[0].mxu0 }
 0x107   : > { %v798_v34 = vpop.f32.mrb[1].mxu0 }
 0x108   : > { %v348_v35 = vpop.f32.mrb[2].mxu0 }
 0x109   : > { %v799_v37 = vpop.f32.mrb[3].mxu0 }
 0x10a   : > { %v392_v36 = vpop.f32.mrb[0].mxu1 }
 0x10b   : > { %v393_v38 = vadd.f32 %v392_v36, %v345_v33  ;;  %v804_v39 = vpop.f32.mrb[1].mxu1 }
 0x10c   : > { %v395_v40 = vpop.f32.mrb[2].mxu1 }
 0x10d   : > { %v396_v41 = vadd.f32 %v395_v40, %v348_v35  ;;  %v805_v42 = vpop.f32.mrb[3].mxu1 }
 0x10e   : > { %v442_v43 = vpop.f32.mrb[4].mxu0 }
 0x10f   : > { %v449_v45 = vadd.f32 %v442_v43, %v393_v38  ;;  %v810_v46 = vpop.f32.mrb[5].mxu0 }
 0x110   : > { %v445_v47 = vpop.f32.mrb[6].mxu0 }
 0x111   : > { %v458_v48 = vadd.f32 %v765_v44, %v449_v45  ;;  %v450_v49 = vadd.f32 %v445_v47, %v396_v41  ;;  %v811_v50 = vpop.f32.mrb[7].mxu0 }
 0x113   : > { %v460_v51 = vmax.f32 %v458_v48, 0.0  ;;  %v459_v52 = vadd.f32 %v765_v44, %v450_v49 }
 0x115   : > { %v464_v53 = vrot.slane %v460_v51, 7  ;;  %v461_v54 = vmax.f32 %v459_v52, 0.0  ;;  %v472_v55 = vrot.slane %v460_v51, 1 }
 0x117   : > { %v469_v57 = vsel %vm272_vm3, %v460_v51, %v464_v53  ;;  %v465_v58 = vrot.slane %v461_v54, 7  ;;  %v473_v59 = vrot.slane %v461_v54, 1  ;;  %v485_v60 = vpack.c.bf16 %v461_v54, %v460_v51 }
 0x118   : > { %v470_v61 = vsel %vm1005_vm5, 0.0, %v469_v57 }
 0x119   : > { %v477_v62 = vsel %vm285_vm4, %v473_v59, %v461_v54  ;;  %817 = vmatmul.mubr.msk.bf16.vlgmr.msra.gmra.mrb[4].mxu1 %vm503_vm7, %v485_v60  ;;  %v466_v63 = vsel %vm272_vm3, %v464_v53, %v465_v58  ;;  %v474_v0 = vsel %vm285_vm4, %v472_v55, %v473_v59 }
 0x11a   : > { %v479_v2 = vsel %vm1016_vm6, 0.0, %v477_v62  ;;  %829 = vmatpush3.bf16.msra.mxu1 %v863_v56  ;;  %v480_v3 = vpack.c.bf16 %v466_v63, %v470_v61  ;;  %832 = vmatprep.mubr.msk.bf16.mxu1 %vm909_vm0, %v908_v1 }
 0x11b   : > { %830 = vmatprep.subr.bf16.mxu1 %v908_v1  ;;  %v604_v5 = vpack.c.bf16 %v479_v2, %v474_v0  ;;  %v775_v1 = vld [vmem:[%s1073_s4] ss:$0 sm:$0xff] }
 0x11c   : > { %825 = vmatmul.mubr.msk.bf16.vlgmr.msra.gmra.mrb[8].mxu0 %vm503_vm7, %v480_v3 }
 0x11e   : > { %831 = vmatpush3.bf16.msra.mxu1 %v864_v4 }
 0x121   : > { %833 = vmatmul.mubr.msk.bf16.vlgmr.msra.gmra.mrb[8].mxu1 %vm503_vm7, %v604_v5 }
 0x1ec   : > { %v541_v6 = vpop.f32.mrb[4].mxu1 }
 0x1ed   : > { %v818_v7 = vpop.f32.mrb[5].mxu1 }
 0x1ee   : > { %v544_v8 = vpop.f32.mrb[6].mxu1 }
 0x1ef   : > { %v819_v9 = vpop.f32.mrb[7].mxu1  ;;  %v597_v10 = vpop.f32.mrb[8].mxu0 }
 0x1f0   : > { %v598_v11 = vadd.f32 %v597_v10, %v541_v6  ;;  %v826_v12 = vpop.f32.mrb[9].mxu0 }
 0x1f1   : > { %v600_v13 = vpop.f32.mrb[10].mxu0 }
 0x1f2   : > { %v601_v14 = vadd.f32 %v600_v13, %v544_v8  ;;  %v827_v15 = vpop.f32.mrb[11].mxu0 }
 0x1f4   : > { %v659_v16 = vpop.f32.mrb[8].mxu1 }
 0x1f5   : > { %v666_v17 = vadd.f32 %v659_v16, %v598_v11  ;;  %v834_v18 = vpop.f32.mrb[9].mxu1 }
 0x1f6   : > { %v662_v19 = vpop.f32.mrb[10].mxu1 }
 0x1f7   : > { %v675_v20 = vadd.f32 %v775_v1, %v666_v17  ;;  %v667_v21 = vadd.f32 %v662_v19, %v601_v14  ;;  %v835_v22 = vpop.f32.mrb[11].mxu1 }
 0x1f9   : > { %v677_v23 = vmax.f32 %v675_v20, 0.0  ;;  %v676_v24 = vadd.f32 %v775_v1, %v667_v21 }
 0x1fb   : > { %v678_v25 = vmax.f32 %v676_v24, 0.0  ;;  %v680_v26 = vsel %vm679_vm8, %v677_v23, 0.0 }
 0x1fd   : > { %v681_v27 = vsel %vm679_vm8, %v678_v25, 0.0 }
 0x1fe   : > { %v682_v28 = vadd.f32 %v681_v27, %v680_v26 }
 0x200   : > { %v683_v29 = vrot.slane %v682_v28, 4 }
 0x202   : > { %v684_v30 = vadd.f32 %v683_v29, %v682_v28 }
 0x204   : > { %v685_v31 = vrot.slane %v684_v30, 2 }
 0x206   : > { %v686_v32 = vadd.f32 %v685_v31, %v684_v30 }
 0x208   : > { %v687_v33 = vrot.slane %v686_v32, 1 }
 0x20a   : > { %v688_v34 = vadd.f32 %v687_v33, %v686_v32 }
 0x20c   : > { %v689_v35 = vmul.f32 0.0625, %v688_v34 }
 0x20e   : > { %691 = vst.msk [vmem:[%s235_s29] sm:$0x1] %vm690_vm9, %v689_v35 }
 0x20f PF: > { %s16_s18 = sadd.s32 1, %s903_s18  }
 0x210   : > { %p13_p3 = scmp.ge.s32.totalorder %s16_s18, 4  }
 0x212   :  { %15 = sbr.rel (!%p13_p3) target bundleno = 1 (0x1), region = 79 }
 0x219   :  { %709 = vsyncpa [#allocation3], 1 }
 0x21a   :  { %711 = vsyncpa [#allocation3 + $0x1], 1 }

</bundles_post_ra>
